<compile_context>
chip_gen: v7x
topology: tpu7x:2x2x1
jax: 0.10.0
libtpu: 0.0.40
codegen_flags: <defaults>
</compile_context>

<pallas_src>
import functools

import jax
import jax.numpy as jnp
from jax.experimental import pallas as pl
from jax.experimental.pallas import tpu as pltpu

_LANE = 128


def _mse_partial_sum_kernel(o_ref, t_ref, out_ref, *, block_rows, rows_valid, ragged):
    """Per-block partial sum of squared error, reduced to a lane-dense (1,128) row."""
    d = o_ref[...].astype(jnp.float32) - t_ref[...].astype(jnp.float32)
    sq = d * d
    if ragged:
        # Zero out-of-range rows of the ragged last block (Pallas edge blocks
        # read undefined padding); select discards any garbage/NaN values.
        row = pl.program_id(0) * block_rows + jax.lax.broadcasted_iota(
            jnp.int32, sq.shape, 0)
        sq = jnp.where(row < rows_valid, sq, 0.0)
    out_ref[...] = jnp.sum(sq, axis=0, keepdims=True)  # sublane-only (XLU) reduce


def _mse_none_kernel(o_ref, t_ref, out_ref):
    """Elementwise squared error (reduction='none'); ragged rows are simply not written back."""
    d = o_ref[...].astype(jnp.float32) - t_ref[...].astype(jnp.float32)
    out_ref[...] = (d * d).astype(out_ref.dtype)


def _per_buffer_tile_bytes():
    """~4 MiB tiles on v6e/v7x (32 MiB default scoped VMEM), ~2 MiB otherwise (v5e: 16 MiB)."""
    try:
        kind = jax.devices()[0].device_kind.lower()
    except Exception:
        kind = ""
    if ("v6" in kind) or ("v7" in kind) or ("7x" in kind):
        return 4 << 20
    return 2 << 20  # safe on v5e and any unrecognized generation


def _pick_block_rows(rows_total, itemsize):
    """Dtype-aware block rows: constant-byte tiles, rounded to the native sublane multiple."""
    sub = max(8, 32 // itemsize)  # 8 (f32) / 16 (bf16) / 32 (int8/fp8)
    tile_rows = max(sub, (_per_buffer_tile_bytes() // (_LANE * itemsize)) // sub * sub)
    rows_cap = -(-rows_total // sub) * sub  # small inputs -> one small block
    return min(tile_rows, rows_cap)


@functools.partial(jax.jit, static_argnames=("reduction",))
def recon_loss(output, target, reduction="mean"):
    """JAX/Pallas equivalent of ReconLoss(reduction)(output, target)."""
    assert output.shape == target.shape, "output/target shapes must match"
    if reduction not in ("mean", "sum", "none"):
        raise ValueError(f"unsupported reduction: {reduction}")

    n = output.size
    if n == 0:
        if reduction == "none":
            return jnp.zeros(output.shape, output.dtype)
        if reduction == "sum":
            return jnp.zeros((), output.dtype)
        return jnp.full((), jnp.nan, output.dtype)  # PyTorch: mean over empty -> nan

    itemsize = jnp.dtype(output.dtype).itemsize
    o_flat = jnp.ravel(output)
    t_flat = jnp.ravel(target)

    tail = n % _LANE
    if tail:
        # TODO(synk): n % 128 != 0 takes one zero-pad copy of each input; a fully
        # copy-free path would need a 1-D block view of the flat arrays.
        pad = _LANE - tail
        o_flat = jnp.pad(o_flat, (0, pad))
        t_flat = jnp.pad(t_flat, (0, pad))

    rows = o_flat.shape[0] // _LANE
    o2d = o_flat.reshape(rows, _LANE)  # layout-preserving, no copy
    t2d = t_flat.reshape(rows, _LANE)

    block_rows = _pick_block_rows(rows, itemsize)
    num_blocks = -(-rows // block_rows)  # ceil div
    ragged = (rows % block_rows) != 0

    if reduction == "none":
        sq2d = pl.pallas_call(
            _mse_none_kernel,
            out_shape=jax.ShapeDtypeStruct((rows, _LANE), output.dtype),
            grid_spec=pltpu.PrefetchScalarGridSpec(
                num_scalar_prefetch=0,
                grid=(num_blocks,),
                in_specs=[
                    pl.BlockSpec((block_rows, _LANE), lambda i: (i, 0)),
                    pl.BlockSpec((block_rows, _LANE), lambda i: (i, 0)),
                ],
                out_specs=pl.BlockSpec((block_rows, _LANE), lambda i: (i, 0)),
            ),
            compiler_params=pltpu.CompilerParams(
                dimension_semantics=("parallel",),
            ),
            cost_estimate=pl.CostEstimate(
                flops=2 * n, transcendentals=0, bytes_accessed=3 * n * itemsize),
        )(o2d, t2d)
        sq_flat = sq2d.reshape(-1)
        if tail:
            sq_flat = sq_flat[:n]
        return sq_flat.reshape(output.shape)

    # --- 'sum' / 'mean' ---
    kernel = functools.partial(
        _mse_partial_sum_kernel,
        block_rows=block_rows, rows_valid=rows, ragged=ragged)
    partials = pl.pallas_call(
        kernel,
        out_shape=jax.ShapeDtypeStruct((num_blocks, _LANE), jnp.float32),
        grid_spec=pltpu.PrefetchScalarGridSpec(
            num_scalar_prefetch=0,
            grid=(num_blocks,),
            in_specs=[
                pl.BlockSpec((block_rows, _LANE), lambda i: (i, 0)),
                pl.BlockSpec((block_rows, _LANE), lambda i: (i, 0)),
            ],
            out_specs=pl.BlockSpec((1, _LANE), lambda i: (i, 0)),
        ),
        compiler_params=pltpu.CompilerParams(
            dimension_semantics=("parallel",),
        ),
        cost_estimate=pl.CostEstimate(
            flops=3 * n, transcendentals=0, bytes_accessed=2 * n * itemsize),
    )(o2d, t2d)

    total = jnp.sum(partials)  # tiny (num_blocks, 128) f32 reduce in XLA
    if reduction == "sum":
        return total.astype(output.dtype)
    return (total / jnp.float32(n)).astype(output.dtype)


if __name__ == "__main__":
    key = jax.random.PRNGKey(0)
    k1, k2 = jax.random.split(key)

    # small NCHW shape consistent with an image-reconstruction loss
    x_shape = (2, 4, 16, 16)
    output = jax.random.normal(k1, x_shape, dtype=jnp.float32)
    target = jax.random.normal(k2, x_shape, dtype=jnp.float32)

    # reduction='mean' (PyTorch default)
    loss_mean = recon_loss(output, target, reduction="mean")
    jax.block_until_ready(loss_mean)
    ref_mean = jnp.mean((output - target) ** 2)
    assert jnp.allclose(loss_mean, ref_mean, rtol=1e-5, atol=1e-6), (loss_mean, ref_mean)

    # reduction='sum'
    loss_sum = recon_loss(output, target, reduction="sum")
    jax.block_until_ready(loss_sum)
    ref_sum = jnp.sum((output - target) ** 2)
    assert jnp.allclose(loss_sum, ref_sum, rtol=1e-5, atol=1e-4), (loss_sum, ref_sum)

    # reduction='none'
    loss_none = recon_loss(output, target, reduction="none")
    jax.block_until_ready(loss_none)
    ref_none = (output - target) ** 2
    assert loss_none.shape == x_shape
    assert jnp.allclose(loss_none, ref_none, rtol=1e-5, atol=1e-6)

    # ragged-rows case (rows not a multiple of the sublane count) -> in-kernel mask
    y_shape = (2, 3, 16, 16)  # 1536 elements -> 12 rows of 128
    o2 = jax.random.normal(k1, y_shape, dtype=jnp.float32)
    t2 = jax.random.normal(k2, y_shape, dtype=jnp.float32)
    m2 = recon_loss(o2, t2, reduction="mean")
    jax.block_until_ready(m2)
    assert jnp.allclose(m2, jnp.mean((o2 - t2) ** 2), rtol=1e-5, atol=1e-6)

    # lane-unaligned case (n % 128 != 0) -> pad fallback path
    z_shape = (3, 5, 7)  # 105 elements
    o3 = jax.random.normal(k1, z_shape, dtype=jnp.float32)
    t3 = jax.random.normal(k2, z_shape, dtype=jnp.float32)
    m3 = recon_loss(o3, t3, reduction="mean")
    n3 = recon_loss(o3, t3, reduction="none")
    jax.block_until_ready((m3, n3))
    assert jnp.allclose(m3, jnp.mean((o3 - t3) ** 2), rtol=1e-5, atol=1e-6)
    assert n3.shape == z_shape
    assert jnp.allclose(n3, (o3 - t3) ** 2, rtol=1e-5, atol=1e-6)

    print("KERNEL_OK")
</pallas_src>

<mosaic_0001>
module attributes {stable_mosaic.version = 11 : i64} {
  func.func @_mse_partial_sum_kernel(%arg0: i32, %arg1: memref<16x128xf32, #tpu.memory_space<vmem>>, %arg2: memref<16x128xf32, #tpu.memory_space<vmem>>, %arg3: memref<1x128xf32, #tpu.memory_space<vmem>>) attributes {dimension_semantics = [#tpu.dimension_semantics<parallel>], iteration_bounds = array<i64: 1>, scalar_prefetch = 0 : i64, scratch_operands = 0 : i64, tpu.core_type = #tpu.core_type<tc>, window_params = [{transform_indices = @transform_0, window_bounds = array<i64: 16, 128>}, {transform_indices = @transform_1, window_bounds = array<i64: 16, 128>}, {transform_indices = @transform_2, window_bounds = array<i64: 1, 128>}]} {
    %c0 = arith.constant 0 : index
    %c0_0 = arith.constant 0 : index
    %0 = vector.load %arg1[%c0, %c0_0] : memref<16x128xf32, #tpu.memory_space<vmem>>, vector<16x128xf32>
    %c0_1 = arith.constant 0 : index
    %c0_2 = arith.constant 0 : index
    %1 = vector.load %arg2[%c0_1, %c0_2] : memref<16x128xf32, #tpu.memory_space<vmem>>, vector<16x128xf32>
    %2 = arith.subf %0, %1 : vector<16x128xf32>
    %3 = arith.mulf %2, %2 : vector<16x128xf32>
    %cst = arith.constant dense<0.000000e+00> : vector<128xf32>
    %4 = vector.multi_reduction <add>, %3, %cst [0] : vector<16x128xf32> to vector<128xf32>
    %5 = vector.shape_cast %4 : vector<128xf32> to vector<1x128xf32>
    %c0_3 = arith.constant 0 : index
    %c0_4 = arith.constant 0 : index
    %6 = vector.load %arg3[%c0_3, %c0_4] : memref<1x128xf32, #tpu.memory_space<vmem>>, vector<1x128xf32>
    tpu.vector_store %arg3[%c0_3, %c0_4], %5 {strides = array<i32>} : memref<1x128xf32, #tpu.memory_space<vmem>>, vector<1x128xf32>,
    return
  }
  func.func @transform_0(%arg0: i32) -> (i32, i32) {
    %c0_i32 = arith.constant 0 : i32
    %c0_i32_0 = arith.constant 0 : i32
    return %arg0, %c0_i32 : i32, i32
  }
  func.func @transform_1(%arg0: i32) -> (i32, i32) {
    %c0_i32 = arith.constant 0 : i32
    %c0_i32_0 = arith.constant 0 : i32
    return %arg0, %c0_i32 : i32, i32
  }
  func.func @transform_2(%arg0: i32) -> (i32, i32) {
    %c0_i32 = arith.constant 0 : i32
    %c0_i32_0 = arith.constant 0 : i32
    return %arg0, %c0_i32 : i32, i32
  }
}

</mosaic_0001>

<bundles_post_ra>
// kernel: recon_loss.1
= control target key start
LH: loop header
LB: loop body
LE: loop exit
PB: predicated region body
PF: predicated region fallthrough
CT: control target
= control target key end

     0   :  { %s61_s0 = inlined_call_operand.vmem [shape: f32[16,128], index: 0, kind: input, shape index: {}]   ;;  %s62_s1 = inlined_call_operand.vmem [shape: f32[16,128], index: 1, kind: input, shape index: {}]   ;;  %s63_s2 = inlined_call_operand.vmem [shape: f32[1,128], index: 2, kind: output, shape index: {}]  }
   0x1   :  { %v11_v0 = vld [vmem:[%s61_s0] sm:$0xff]  ;;  %v12_v1 = vld [vmem:[%s61_s0 + $0x8] sm:$0xff] }
   0x2   :  { %v13_v2 = vld [vmem:[%s62_s1] sm:$0xff]  ;;  %v14_v3 = vld [vmem:[%s62_s1 + $0x8] sm:$0xff] }
   0x3   :  { %v15_v4 = vsub.f32 %v11_v0, %v13_v2  ;;  %v16_v5 = vsub.f32 %v12_v1, %v14_v3 }
   0x5   :  { %v17_v6 = vmul.f32 %v15_v4, %v15_v4  ;;  %v18_v7 = vmul.f32 %v16_v5, %v16_v5 }
   0x7   :  { %v19_v8 = vadd.f32 %v18_v7, %v17_v6 }
   0x9   :  { %v20_v9 = vrot.slane %v19_v8, 4 }
   0xb   :  { %v21_v10 = vadd.f32 %v20_v9, %v19_v8 }
   0xd   :  { %v22_v11 = vrot.slane %v21_v10, 2 }
   0xf   :  { %v23_v12 = vadd.f32 %v22_v11, %v21_v10 }
  0x11   :  { %v24_v13 = vrot.slane %v23_v12, 1 }
  0x13   :  { %v25_v14 = vadd.f32 %v24_v13, %v23_v12 }
  0x15   :  { %26 = vst [vmem:[%s63_s2] sm:$0x1] %v25_v14 }

</bundles_post_ra>
